<compile_context>
chip_gen: v7x
topology: tpu7x:2x2x1
jax: 0.10.0
libtpu: 0.0.40
codegen_flags: <defaults>
</compile_context>

<pallas_src>
import math
import jax
import jax.numpy as jnp
from jax.experimental import pallas as pl
from jax.experimental.pallas import tpu as pltpu


def _geneexp_kernel(x_ref, wb_ref, o_ref):
    # x_ref: (TM, 1); wb_ref: (2, D) = [scaled weight; scaled bias]; o_ref: (TM, D)
    w = wb_ref[0:1, :]
    b = wb_ref[1:2, :]
    o_ref[...] = (x_ref[...] * w + b).astype(o_ref.dtype)


def _round_up(n, m):
    return ((n + m - 1) // m) * m


def _choose_tm(d_model, out_bytes, x_bytes, tm_max=32768,
               budget_bytes=24 * 1024 * 1024):
    """Largest row tile keeping double-buffered VMEM under budget.

    Per row of a tile we hold (each double-buffered by the pipeline):
      - the x block, lane-padded to 128 lanes:   128 * x_bytes
      - the output block:                        d_model * out_bytes
    """
    per_row = (d_model * out_bytes + 128 * x_bytes) * 2
    tm = budget_bytes // per_row
    tm = max(8, (tm // 8) * 8)          # sublane-aligned
    return min(tm_max, tm)


def geneexp_embedding(x, weight, bias, *, tm=None, out_dtype=None):
    """x: (B, S, 1); weight: (d_model, 1); bias: (d_model,) -> (B, S, d_model)."""
    B, S, one = x.shape
    assert one == 1
    d_model = weight.shape[0]
    scale = math.sqrt(d_model)
    out_dtype = jnp.dtype(x.dtype if out_dtype is None else out_dtype)

    # Native bf16 compute when emitting bf16 (v6e/v7x bf16 VALU); else f32.
    compute_dtype = jnp.bfloat16 if out_dtype == jnp.bfloat16 else jnp.float32

    M = B * S
    x2 = x.reshape(M, 1).astype(compute_dtype)

    # Fold sqrt(d_model) into weight and bias; merge into one (2, d) block.
    wb = jnp.concatenate(
        [weight.reshape(1, d_model), bias.reshape(1, d_model)], axis=0
    ).astype(jnp.float32) * jnp.float32(scale)
    wb = wb.astype(compute_dtype)

    out_bytes = out_dtype.itemsize
    x_bytes = jnp.dtype(compute_dtype).itemsize
    if tm is None:
        tm = _choose_tm(d_model, out_bytes, x_bytes)
    tm = min(tm, _round_up(M, 8))        # no tile larger than the data
    tm = max(8, (tm // 8) * 8)
    # Megacore guard: make sure both v7x TensorCores get at least one block.
    if pl.cdiv(M, tm) < 2 and M > 16:
        tm = max(8, _round_up(pl.cdiv(M, 2), 8))
    grid = (pl.cdiv(M, tm),)

    # VMEM: double-buffered x (lane-padded) + output blocks + resident wb.
    vmem_bytes = (2 * tm * (d_model * out_bytes + 128 * x_bytes)
                  + 2 * 8 * d_model * 4 + (4 << 20))
    vmem_limit = int(min(max(vmem_bytes, 16 << 20), 48 << 20))

    out = pl.pallas_call(
        _geneexp_kernel,
        out_shape=jax.ShapeDtypeStruct((M, d_model), out_dtype),
        grid_spec=pltpu.PrefetchScalarGridSpec(
            num_scalar_prefetch=0,
            grid=grid,
            in_specs=[
                pl.BlockSpec((tm, 1), lambda i: (i, 0)),        # x rows tile
                pl.BlockSpec((2, d_model), lambda i: (0, 0)),   # scaled [w; b], resident
            ],
            out_specs=pl.BlockSpec((tm, d_model), lambda i: (i, 0)),
        ),
        compiler_params=pltpu.CompilerParams(
            dimension_semantics=("parallel",),   # shard row blocks across TCs on v7x
            vmem_limit_bytes=vmem_limit,
        ),
    )(x2, wb)

    return out.reshape(B, S, d_model)


def geneexp_embedding_ref(x, weight, bias):
    d_model = weight.shape[0]
    return (x @ weight.T + bias) * math.sqrt(d_model)


if __name__ == "__main__":
    key = jax.random.PRNGKey(0)
    k_x, k_w, k_b = jax.random.split(key, 3)

    # ---- main check: lane-aligned d_model ------------------------------------
    B, S, d_model = 2, 64, 128
    x = jax.random.normal(k_x, (B, S, 1), dtype=jnp.float32)
    bound = 1.0  # fan_in = 1 -> 1/sqrt(1), like torch's default nn.Linear init
    weight = jax.random.uniform(k_w, (d_model, 1), minval=-bound, maxval=bound,
                                dtype=jnp.float32)
    bias = jax.random.uniform(k_b, (d_model,), minval=-bound, maxval=bound,
                              dtype=jnp.float32)

    y = jax.block_until_ready(geneexp_embedding(x, weight, bias))
    y_ref = geneexp_embedding_ref(x, weight, bias)
    assert y.shape == (B, S, d_model)
    assert jnp.allclose(y, y_ref, atol=1e-4, rtol=1e-4), "mismatch vs reference"

    # ---- robustness: M % tm != 0 (ragged last block) and d_model % 128 != 0 --
    B2, S2, d2 = 1, 37, 96
    x_b = jax.random.normal(k_x, (B2, S2, 1), dtype=jnp.float32)
    w_b = jax.random.uniform(k_w, (d2, 1), minval=-1.0, maxval=1.0, dtype=jnp.float32)
    b_b = jax.random.uniform(k_b, (d2,), minval=-1.0, maxval=1.0, dtype=jnp.float32)
    y_b = jax.block_until_ready(geneexp_embedding(x_b, w_b, b_b))
    y_b_ref = geneexp_embedding_ref(x_b, w_b, b_b)
    assert y_b.shape == (B2, S2, d2)
    assert jnp.allclose(y_b, y_b_ref, atol=1e-4, rtol=1e-4), \
        "mismatch vs reference (ragged / non-128 d_model case)"

    # ---- bf16-native output path ----------------------------------------------
    y_h = jax.block_until_ready(
        geneexp_embedding(x, weight, bias, out_dtype=jnp.bfloat16))
    assert y_h.dtype == jnp.bfloat16
    assert jnp.allclose(y_h.astype(jnp.float32), y_ref, atol=0.5, rtol=0.1), \
        "mismatch vs reference (bf16 path)"

    print("KERNEL_OK")
</pallas_src>

<mosaic_0001>
module attributes {stable_mosaic.version = 11 : i64} {
  func.func @_geneexp_kernel(%arg0: i32, %arg1: memref<64x1xf32, #tpu.memory_space<vmem>>, %arg2: memref<2x128xf32, #tpu.memory_space<vmem>>, %arg3: memref<64x128xf32, #tpu.memory_space<vmem>>) attributes {dimension_semantics = [#tpu.dimension_semantics<parallel>], iteration_bounds = array<i64: 2>, scalar_prefetch = 0 : i64, scratch_operands = 0 : i64, tpu.core_type = #tpu.core_type<tc>, window_params = [{transform_indices = @transform_0, window_bounds = array<i64: 64, 1>}, {pipeline_mode = #tpu.pipeline_mode<synchronous>, transform_indices = @transform_1, window_bounds = array<i64: 2, 128>}, {transform_indices = @transform_2, window_bounds = array<i64: 64, 128>}]} {
    %c0 = arith.constant 0 : index
    %c0_0 = arith.constant 0 : index
    %0 = vector.load %arg2[%c0, %c0_0] : memref<2x128xf32, #tpu.memory_space<vmem>>, vector<1x128xf32>
    %c1 = arith.constant 1 : index
    %c0_1 = arith.constant 0 : index
    %1 = vector.load %arg2[%c1, %c0_1] : memref<2x128xf32, #tpu.memory_space<vmem>>, vector<1x128xf32>
    %c0_2 = arith.constant 0 : index
    %c0_3 = arith.constant 0 : index
    %2 = vector.load %arg1[%c0_2, %c0_3] : memref<64x1xf32, #tpu.memory_space<vmem>>, vector<64x1xf32>
    %3 = vector.broadcast %2 : vector<64x1xf32> to vector<64x128xf32>
    %4 = vector.broadcast %0 : vector<1x128xf32> to vector<64x128xf32>
    %5 = arith.mulf %3, %4 : vector<64x128xf32>
    %6 = vector.broadcast %1 : vector<1x128xf32> to vector<64x128xf32>
    %7 = arith.addf %5, %6 : vector<64x128xf32>
    %c0_4 = arith.constant 0 : index
    %c0_5 = arith.constant 0 : index
    %8 = vector.load %arg3[%c0_4, %c0_5] : memref<64x128xf32, #tpu.memory_space<vmem>>, vector<64x128xf32>
    tpu.vector_store %arg3[%c0_4, %c0_5], %7 {strides = array<i32>} : memref<64x128xf32, #tpu.memory_space<vmem>>, vector<64x128xf32>,
    return
  }
  func.func @transform_0(%arg0: i32) -> (i32, i32) {
    %c0_i32 = arith.constant 0 : i32
    %c0_i32_0 = arith.constant 0 : i32
    return %arg0, %c0_i32 : i32, i32
  }
  func.func @transform_1(%arg0: i32) -> (i32, i32) {
    %c0_i32 = arith.constant 0 : i32
    %c0_i32_0 = arith.constant 0 : i32
    %c0_i32_1 = arith.constant 0 : i32
    return %c0_i32, %c0_i32_0 : i32, i32
  }
  func.func @transform_2(%arg0: i32) -> (i32, i32) {
    %c0_i32 = arith.constant 0 : i32
    %c0_i32_0 = arith.constant 0 : i32
    return %arg0, %c0_i32 : i32, i32
  }
}

</mosaic_0001>

<bundles_post_ra>
// kernel: tpu_custom_call.1
= control target key start
LH: loop header
LB: loop body
LE: loop exit
PB: predicated region body
PF: predicated region fallthrough
CT: control target
= control target key end

     0   :  { %7 = vsyncpa [#allocation3], 0  ;;  %s557_s0 = inlined_call_operand.vmem [shape: f32[128,1], index: 0, kind: input, shape index: {}]   ;;  %s558_s1 = inlined_call_operand.vmem [shape: f32[2,128], index: 1, kind: input, shape index: {}]   ;;  %s559_s2 = inlined_call_operand.hbm [shape: f32[128,128], index: 2, kind: output, shape index: {}]  }
   0x1   :  { %9 = vsyncpa [#allocation3 + $0x1], 0  ;;  %s445_s9 = smov 0   ;;  %s447_s10 = smov 0  }
   0x2   :  { %s449_s11 = smov 0   ;;  %s451_s12 = smov 0  }
   0x3 LB: > { %s466_s13 = sadd.s32 4294967295, %s424_s12   ;;  %s303_s14 = sadd.s32 4294967294, %s424_s12   ;;  %s424_s12 = sphi %s451_s12, %s565_s12   ;;  %s420_s11 = sphi %s449_s11, %s564_s11   ;;  %s416_s10 = sphi %s447_s10, %s563_s10   ;;  %s412_s9 = sphi %s445_s9, %s562_s9  }
   0x4   : > { %s470_s15 = sadd.s32 1, %s424_s12   ;;  %s69_s16 = sadd.s32 1, %s420_s11 }
   0x5   : > { %s66_s17 = ssub.s32 %s424_s12, %s470_s15  ;;  %p79_p0 = scmp.ne.s32.totalorder %s420_s11, %s416_s10 }
   0x6   : > { %p67_p1 = scmp.eq.s32.totalorder %s66_s17, 0  ;;  %p80_p2 = scmp.eq.s32.totalorder %s466_s13, 1 }
   0x7   : > { %p85_p3 = scmp.ne.s32.totalorder %s416_s10, %s412_s9  ;;  %p86_p4 = scmp.eq.s32.totalorder %s303_s14, 1 }
   0x8   : > { %s481_s18 = scalar_select %p67_p1, %s420_s11, %s69_s16  }
   0x9   : > { %p483_p5 = por %p80_p2, %p79_p0  ;;  %p487_p6 = por %p86_p4, %p85_p3 }
   0xa   : > { %p306_p7 = scmp.ge.s32.totalorder %s424_s12, 1  ;;  %p116_p8 = scmp.lt.s32.totalorder %s424_s12, 3 }
   0xc   : > { %p117_p9 = pnand %p306_p7, %p116_p8 }
   0xd   : > { %s308_s21 = sshll.u32 (!%p117_p9), %s466_s13, 3  ;;  %v426_v0 = vmov (!%p117_p9), 0   ;;  %s135_s26 = sand.u32 (!%p117_p9), 1, %s416_s10   ;;  %v310_v9 = vld [vmem:[%s558_s1] ss:$0 sm:$0xff] (!%p117_p9) }
   0xe   : > { %120 = sbr.rel (%p117_p9) target bundleno = 184 (0xb8), region = 28  ;;  %361 = vset.pattern.permute.xlu1 (!%p117_p9), %v426_v0  ;;  %360 = vset.pattern.permute.xlu0 (!%p117_p9), %v426_v0  ;;  %p139_p10 = scmp.lt.s32.totalorder (!%p117_p9), %s308_s21, 15  ;;  %v311_v10 = vld [vmem:[%s558_s1 + $0x1] ss:$0 sm:$0xff] (!%p117_p9) }
   0xf   : > { %s307_s29 = sshll.u32 (!%p117_p9), %s135_s26, 6  ;;  %s317_s5 = sshll.u32 (!%p117_p9), %s466_s13, 10 }
  0x10   : > { %s137_s4 = scalar_lea.vmem (!%p117_p9), [#allocation2], %s307_s29  ;;  %s510_s14 = scalar_lea.hbm (!%p117_p9), %s559_s2, %s317_s5 }
  0x11   : > { %s241_s6 = sshll.u32 (!%p117_p9), %s137_s4, 4  ;;  %s516_s13 = scalar_lea.sflag (!%p117_p9), [#allocation3], %s135_s26  ;;  %s512_s6 = int_to_ptr.vmem [resolvable:$true] %s241_s6 }
  0x12   : > { %s362_s16 = scalar_lea.vmem (!%p117_p9), %s512_s6, 1024  ;;  %s427_s17 = smov (!%p117_p9), [#allocation2]  }
  0x13   : > { %p363_p11 = scmp.ne.s32.totalorder (!%p117_p9), %s512_s6, %s362_s16 }
  0x15   : > { %s567_s21 = smov (!%p139_p10, %s308_s21), 15  ;;  %p364_p12 = pnand %p363_p11, %p483_p5 }
  0x16   : > { %s309_s22 = sshll.u32 %s567_s21, 3  ;;  %s366_s21 = sshll.u32 %s427_s17, 4  ;;  %s367_s21 = int_to_ptr.vmem [resolvable:$false] %s366_s21 }
  0x17   : > { %s142_s25 = scalar_lea.vmem %s557_s0, %s309_s22  ;;  %p365_p13 = pneg %p364_p12 }
  0x18   : > { %v149_v1 = vld [vmem:[%s142_s25 + $0x10] sm:$0xff]  ;;  %v147_v2 = vld [vmem:[%s142_s25] sm:$0xff]  ;;  %v150_v3 = vld [vmem:[%s142_s25 + $0x18] sm:$0xff]  ;;  %s368_s22 = scalar_lea.vmem %s367_s21, 2048  ;;  %p369_p0 = scmp.lt.s32.totalorder %s512_s6, %s367_s21 }
  0x19   : > { %167 = vperm.xlu1 %361, %v149_v1   ;;  %157 = vperm.xlu0 %360, %v147_v2   ;;  %v148_v4 = vld [vmem:[%s142_s25 + $0x8] sm:$0xff]  ;;  %v151_v6 = vld [vmem:[%s142_s25 + $0x20] sm:$0xff]  ;;  %v154_v7 = vld [vmem:[%s142_s25 + $0x38] sm:$0xff]  ;;  %p370_p1 = scmp.lt.s32.totalorder %s368_s22, %s362_s16 }
  0x1a   : > { %v152_v5 = vld [vmem:[%s142_s25 + $0x28] sm:$0xff]  ;;  %v153_v8 = vld [vmem:[%s142_s25 + $0x30] sm:$0xff] }
  0x1b   : > { %p371_p2 = por %p370_p1, %p369_p0 }
  0x1d   : > { %172 = vperm.xlu1 %361, %v150_v3   ;;  %162 = vperm.xlu0 %360, %v148_v4   ;;  %p372_p3 = pnand %p371_p2, %p365_p13 }
  0x21   : > { %182 = vperm.xlu1 %361, %v152_v5   ;;  %177 = vperm.xlu0 %360, %v151_v6  }
  0x25   : > { %192 = vperm.xlu1 %361, %v154_v7   ;;  %187 = vperm.xlu0 %360, %v153_v8  }
  0x98   : > { %v168_v11 = vpop.permute.xlu1 %167  ;;  %v158_v12 = vpop.permute.xlu0 %157 }
  0x99   : > { %v201_v13 = vmul.f32 %v310_v9, %v168_v11  ;;  %v199_v14 = vmul.f32 %v310_v9, %v158_v12 }
  0x9b   : > { %v213_v15 = vadd.f32 %v311_v10, %v201_v13  ;;  %v211_v16 = vadd.f32 %v311_v10, %v199_v14 }
  0x9c   : > { %v173_v17 = vpop.permute.xlu1 %172  ;;  %v163_v18 = vpop.permute.xlu0 %162 }
  0x9d   : > { %221 = vst [vmem:[%s137_s4 + $0x10] sm:$0xff] %v213_v15  ;;  %219 = vst [vmem:[%s137_s4] sm:$0xff] %v211_v16  ;;  %v202_v19 = vmul.f32 %v310_v9, %v173_v17  ;;  %v200_v20 = vmul.f32 %v310_v9, %v163_v18 }
  0x9f   : > { %v214_v21 = vadd.f32 %v311_v10, %v202_v19  ;;  %v212_v22 = vadd.f32 %v311_v10, %v200_v20 }
  0xa0   : > { %v183_v23 = vpop.permute.xlu1 %182  ;;  %v178_v24 = vpop.permute.xlu0 %177 }
  0xa1   : > { %222 = vst [vmem:[%s137_s4 + $0x18] sm:$0xff] %v214_v21  ;;  %220 = vst [vmem:[%s137_s4 + $0x8] sm:$0xff] %v212_v22  ;;  %v204_v25 = vmul.f32 %v310_v9, %v183_v23  ;;  %v203_v26 = vmul.f32 %v310_v9, %v178_v24 }
  0xa3   : > { %v216_v27 = vadd.f32 %v311_v10, %v204_v25  ;;  %v215_v28 = vadd.f32 %v311_v10, %v203_v26 }
  0xa4   : > { %v193_v29 = vpop.permute.xlu1 %192  ;;  %v188_v30 = vpop.permute.xlu0 %187 }
  0xa5   : > { %224 = vst [vmem:[%s137_s4 + $0x28] sm:$0xff] %v216_v27  ;;  %223 = vst [vmem:[%s137_s4 + $0x20] sm:$0xff] %v215_v28  ;;  %v206_v31 = vmul.f32 %v310_v9, %v193_v29  ;;  %v205_v32 = vmul.f32 %v310_v9, %v188_v30 }
  0xa7   : > { %v218_v33 = vadd.f32 %v311_v10, %v206_v31  ;;  %v217_v34 = vadd.f32 %v311_v10, %v205_v32 }
  0xa9   : > { %226 = vst [vmem:[%s137_s4 + $0x38] sm:$0xff] %v218_v33  ;;  %225 = vst [vmem:[%s137_s4 + $0x30] sm:$0xff] %v217_v34 }
  0xaa   : > { %375 = shalt.err (!%p372_p3)
}
  0xab   : > { %s376_s23 = scalar_lea.hbm %s510_s14, 1024  ;;  %s380_s26 = scalar_lea.hbm %s559_s2, 2048 }
  0xac   : > { %p377_p4 = scmp.ne.s32.totalorder %s510_s14, %s376_s23  ;;  %p381_p9 = scmp.lt.u32.totalorder %s510_s14, %s559_s2 }
  0xad   : > { %p382_p10 = scmp.lt.u32.totalorder %s380_s26, %s376_s23  ;;  %p384_p12 = scmp.lt.u32.totalorder %s376_s23, %s510_s14 }
  0xae   : > { %p378_p7 = pnand %p377_p4, %p483_p5 }
  0xaf   : > { %p383_p11 = por %p382_p10, %p381_p9 }
  0xb0   : > { %p379_p8 = pneg %p378_p7 }
  0xb1   : > { %p385_p13 = por %p384_p12, %p383_p11 }
  0xb3   : > { %p386_p0 = pnand %p385_p13, %p379_p8 }
  0xb5   : > { %389 = shalt.err (!%p386_p0)
}
  0xb6   : > { %s428_s29 = smov 128   ;;  %s429_s30 = smov 8  }
  0xb7   : > { %318 = dma.vmem_to_hbm [thread:$0]  (%p483_p5), %s512_s6, 1024, %s510_s14, %s516_s13, %s428_s29, %s428_s29, %s429_s30  }
  0xb8 PF: > { %p324_p1 = scmp.ge.s32.totalorder %s424_s12, 2  ;;  %s256_s3 = sand.u32 1, %s412_s9  }
  0xb9   : > { %s257_s4 = scalar_lea.sflag [#allocation3], %s256_s3 }
  0xba   : > { %p321_p2 = pnand %p324_p1, %p487_p6 }
  0xbc   : > { %407 = dma.done.wait (!%p321_p2), %s257_s4, 1024  }
  0xbd   : > { %409 = vsyncadd (!%p321_p2), %s257_s4, 4294966272  ;;  %p12_p3 = scmp.ge.s32.totalorder %s470_s15, 4   ;;  %s562_s9 = smov %s416_s10 }
  0xbe   : > { %s563_s10 = smov %s420_s11  ;;  %s564_s11 = smov %s481_s18 }
  0xbf   : > { %s565_s12 = smov %s470_s15  ;;  %14 = sbr.rel (!%p12_p3) target bundleno = 3 (0x3), region = 63 }
  0xc6   :  { %262 = vsyncpa [#allocation3], 1 }
  0xc7   :  { %264 = vsyncpa [#allocation3 + $0x1], 1 }

</bundles_post_ra>
